<compile_context>
chip_gen: v5e
topology: v5e:2x2
jax: 0.10.0
libtpu: 0.0.40
codegen_flags: <defaults>
</compile_context>

<pallas_src>
import functools

import jax
import jax.numpy as jnp
from jax.experimental import pallas as pl
from jax.experimental.pallas import tpu as pltpu


# ---------------------------------------------------------------------------
# Pallas kernel: one (batch-tile [, column-tile]) block of z = x @ W.
# Same body serves both grid layouts (W resident, or W tiled over columns).
# ---------------------------------------------------------------------------
def _xw_kernel(w_ref, x_ref, z_ref):
    z_ref[...] = jnp.dot(
        x_ref[...], w_ref[...], preferred_element_type=jnp.float32
    ).astype(z_ref.dtype)


# ---------------------------------------------------------------------------
# Loop-invariant parameter work (hoisted out of the kernel).
# ---------------------------------------------------------------------------
def assemble_w(P, L, U, S, fold=1):
    """W = P @ (tril(L,-1)+I) @ (triu(U,1)+diag(S)), always float32.

    If fold > 1, returns kron(I_fold, W): the block-diagonal weight used by
    the lane-dense folded layout in invertible_1x1_conv_forward.
    """
    dim = S.shape[0]
    Lm = jnp.tril(L.astype(jnp.float32), k=-1) + jnp.eye(dim, dtype=jnp.float32)
    Um = jnp.triu(U.astype(jnp.float32), k=1) + jnp.diag(S.astype(jnp.float32))
    LU = jnp.matmul(Lm, Um, precision=jax.lax.Precision.HIGHEST)
    # P is an exact 0/1 permutation matrix (lu_unpack output), so applying it
    # is a row gather.  NOTE: argmax recovery is exact only for a true
    # permutation matrix; pass the permutation vector directly if P is ever
    # stored in reduced precision or perturbed.
    perm = jnp.argmax(P.astype(jnp.float32), axis=1)
    W = jnp.take(LU, perm, axis=0)
    if fold > 1:
        W = jnp.kron(jnp.eye(fold, dtype=jnp.float32), W)
    return W


# ---------------------------------------------------------------------------
# Tiling heuristics (generation-, dtype-, and layout-padding-aware).
# ---------------------------------------------------------------------------
def _round_up(v, m):
    return ((v + m - 1) // m) * m


def _round_down(v, m):
    return max(m, (v // m) * m)


@functools.lru_cache(maxsize=None)
def _vmem_config():
    """(vmem_limit_bytes, planning_budget_bytes), per TPU generation."""
    cap = 64 * 1024 * 1024                     # conservative default (v7x-sized)
    try:
        cap = int(getattr(pltpu.get_tpu_info(), "vmem_capacity_bytes", cap))
    except Exception:
        pass
    if cap >= 100 * 1024 * 1024:               # v5e / v6e: 128 MiB physical VMEM
        limit = 96 * 1024 * 1024
    else:                                      # v7x: 64 MiB physical per TC
        limit = 48 * 1024 * 1024
    return limit, int(limit * 0.8)


def _sublane(itemsize):
    """Sublane packing multiple for this dtype: 8 f32, 16 bf16, 32 int8/fp8."""
    return max(8, 32 // itemsize)


def _fold_factor(dim):
    """Rows folded into the lane axis so the matmul lane width is >= 128."""
    if dim >= 128:
        return 1
    for target in (128, 256, 384, 512):
        if target % dim == 0:
            return target // dim
    return pl.cdiv(128, dim)


_TARGET_TILE_BYTES = 4 * 1024 * 1024           # ~4 MiB x-tile per grid step


def _pick_block_m(n_rows, lane_width, x_itemsize, w_vmem_bytes, budget, sub):
    """Batch-tile rows for the W-resident layout."""
    row_bytes = _round_up(lane_width, 128) * x_itemsize      # padded lane dim
    per_row = 4 * row_bytes                                  # x + z, 2 buffers each
    avail = max(budget - w_vmem_bytes, per_row * sub)
    tm = min(avail // per_row, max(sub, _TARGET_TILE_BYTES // row_bytes))
    if n_rows >= 2 * sub:                                    # >=2 steps: v7x dual-TC
        tm = min(tm, _round_up(pl.cdiv(n_rows, 2), sub))
    tm = _round_down(tm, sub)
    return n_rows if tm >= n_rows else tm                    # full block is legal


def _pick_block_m_col(n_rows, k_dim, tn, x_itemsize, w_itemsize, budget, sub):
    """Batch-tile rows for the column-split layout (W tile is (k_dim, tn))."""
    k_pad = _round_up(k_dim, 128)
    tn_pad = _round_up(tn, 128)
    w_tile = 2 * k_pad * tn_pad * w_itemsize                 # W column tile, 2 buffers
    per_row = 2 * (k_pad + tn_pad) * x_itemsize              # x + z, 2 buffers each
    avail = max(budget - w_tile, per_row * sub)
    tm = min(avail // per_row, max(sub, _TARGET_TILE_BYTES // (k_pad * x_itemsize)))
    if n_rows >= 2 * sub:
        tm = min(tm, _round_up(pl.cdiv(n_rows, 2), sub))
    tm = _round_down(tm, sub)
    return n_rows if tm >= n_rows else tm


# ---------------------------------------------------------------------------
# Public forward.
# ---------------------------------------------------------------------------
@functools.partial(jax.jit, static_argnames=("block_m", "block_n"))
def invertible_1x1_conv_forward(x, P, L, U, S, *, block_m=None, block_n=None):
    """x: (N, dim); P/L/U: (dim, dim); S: (dim,).  Returns (z, log_det)."""
    n, dim = x.shape
    out_dtype = x.dtype
    x_itemsize = jnp.dtype(out_dtype).itemsize
    w_itemsize = 4                              # W kept in float32 (matches PyTorch)
    sub = _sublane(x_itemsize)
    vmem_limit, budget = _vmem_config()

    log_det = jnp.sum(jnp.log(jnp.abs(S.astype(jnp.float32))))

    # Lane-dense fold for small channel counts: (N, dim) -> (N/k, k*dim) with a
    # block-diagonal W, so every store is >=128 lanes wide instead of `dim`.
    k = _fold_factor(dim)
    W = assemble_w(P, L, U, S, fold=k)
    d_eff = k * dim
    if k > 1:
        n_pad = _round_up(n, k)
        if n_pad != n:
            x = jnp.pad(x, ((0, n_pad - n), (0, 0)))
        x_eff = x.reshape(n_pad // k, d_eff)
    else:
        n_pad = n
        x_eff = x
    m_eff = x_eff.shape[0]

    d_pad = _round_up(d_eff, 128)
    w_resident_bytes = 2 * d_pad * d_pad * w_itemsize        # padded, double-buffered

    use_col_split = (block_n is not None) or (w_resident_bytes > int(0.4 * budget))

    if not use_col_split:
        # ---- W resident in VMEM; 1-D grid over batch tiles -----------------
        tm = block_m if block_m is not None else _pick_block_m(
            m_eff, d_eff, x_itemsize, w_resident_bytes, budget, sub)
        z_eff = pl.pallas_call(
            _xw_kernel,
            out_shape=jax.ShapeDtypeStruct((m_eff, d_eff), out_dtype),
            grid_spec=pltpu.PrefetchScalarGridSpec(
                num_scalar_prefetch=0,
                grid=(pl.cdiv(m_eff, tm),),
                in_specs=[
                    pl.BlockSpec((d_eff, d_eff), lambda i: (0, 0)),  # W: fetched once
                    pl.BlockSpec((tm, d_eff), lambda i: (i, 0)),     # x: streamed tiles
                ],
                out_specs=pl.BlockSpec((tm, d_eff), lambda i: (i, 0)),
            ),
            compiler_params=pltpu.CompilerParams(
                dimension_semantics=("parallel",),   # batch tiles across TCs on v7x
                vmem_limit_bytes=vmem_limit,
            ),
        )(W, x_eff)
    else:
        # ---- Large W: tile W over columns too.  Column axis innermost so the
        # x tile is reused across the column tiles of one batch tile. ---------
        tn = block_n if block_n is not None else min(d_pad, 512)
        tm = block_m if block_m is not None else _pick_block_m_col(
            m_eff, d_eff, tn, x_itemsize, w_itemsize, budget, sub)
        z_eff = pl.pallas_call(
            _xw_kernel,
            out_shape=jax.ShapeDtypeStruct((m_eff, d_eff), out_dtype),
            grid_spec=pltpu.PrefetchScalarGridSpec(
                num_scalar_prefetch=0,
                grid=(pl.cdiv(m_eff, tm), pl.cdiv(d_eff, tn)),
                in_specs=[
                    pl.BlockSpec((d_eff, tn), lambda i, j: (0, j)),   # W column tiles
                    pl.BlockSpec((tm, d_eff), lambda i, j: (i, 0)),   # x reused over j
                ],
                out_specs=pl.BlockSpec((tm, tn), lambda i, j: (i, j)),
            ),
            compiler_params=pltpu.CompilerParams(
                dimension_semantics=("parallel", "parallel"),
                vmem_limit_bytes=vmem_limit,
            ),
        )(W, x_eff)

    z = z_eff.reshape(n_pad, dim)[:n] if k > 1 else z_eff
    return z, log_det


# ---------------------------------------------------------------------------
# Parameter init mirroring the PyTorch __init__ (orthogonal -> LU), and a
# plain-JAX reference for correctness checking.
# ---------------------------------------------------------------------------
def init_params(key, dim):
    g = jax.random.normal(key, (dim, dim), dtype=jnp.float32)
    Q, _ = jnp.linalg.qr(g)                       # orthogonal init
    Pm, Lm, Um = jax.scipy.linalg.lu(Q)           # P @ L @ U = Q
    S = jnp.diag(Um)
    return Pm, Lm, jnp.triu(Um, k=1), S


def reference_forward(x, P, L, U, S):
    dim = S.shape[0]
    hi = jax.lax.Precision.HIGHEST
    Lm = jnp.tril(L, k=-1) + jnp.eye(dim, dtype=jnp.float32)
    Um = jnp.triu(U, k=1) + jnp.diag(S)
    W = jnp.matmul(jnp.matmul(P, Lm, precision=hi), Um, precision=hi)
    z = jnp.matmul(x.astype(jnp.float32), W, precision=hi)
    return z, jnp.sum(jnp.log(jnp.abs(S)))


if __name__ == "__main__":
    key = jax.random.PRNGKey(0)
    k_param, k_x, k_param2, k_x2 = jax.random.split(key, 4)

    # --- small-channel flow case (dim=4): exercises the lane-dense fold ------
    dim, batch = 4, 32
    P, L, U, S = init_params(k_param, dim)
    x = jax.random.normal(k_x, (batch, dim), dtype=jnp.float32)

    z, log_det = invertible_1x1_conv_forward(x, P, L, U, S)
    z = jax.block_until_ready(z)
    log_det = jax.block_until_ready(log_det)
    z_ref, ld_ref = reference_forward(x, P, L, U, S)
    assert z.shape == (batch, dim) and z.dtype == jnp.float32
    assert jnp.allclose(z, z_ref, atol=1e-5, rtol=1e-5), "z mismatch (f32)"
    assert jnp.allclose(log_det, ld_ref, atol=1e-5, rtol=1e-5), "log_det mismatch (f32)"

    # Ragged batch (batch % fold != 0): exercises the pad-and-slice remainder path.
    xr = jax.random.normal(k_x2, (batch + 5, dim), dtype=jnp.float32)
    zr, _ = invertible_1x1_conv_forward(xr, P, L, U, S)
    zr = jax.block_until_ready(zr)
    zr_ref, _ = reference_forward(xr, P, L, U, S)
    assert zr.shape == (batch + 5, dim)
    assert jnp.allclose(zr, zr_ref, atol=1e-5, rtol=1e-5), "z mismatch (ragged)"

    # bf16 activations with f32 W (matches PyTorch f32-weight semantics); the
    # tolerance covers x/z bf16 quantization only.
    z_bf, ld_bf = invertible_1x1_conv_forward(x.astype(jnp.bfloat16), P, L, U, S)
    z_bf = jax.block_until_ready(z_bf)
    assert z_bf.dtype == jnp.bfloat16
    assert jnp.allclose(z_bf.astype(jnp.float32), z_ref, atol=2e-1, rtol=5e-2), \
        "z mismatch (bf16)"
    assert jnp.allclose(ld_bf, ld_ref, atol=1e-5, rtol=1e-5), "log_det mismatch (bf16)"

    # --- wider channel case with a forced W-column split: exercises the 2-D
    # grid path used for large dim on v7x (grid = (2 batch, 2 column) tiles). --
    dim2, batch2 = 256, 64
    P2, L2, U2, S2 = init_params(k_param2, dim2)
    x2 = jax.random.normal(k_x2, (batch2, dim2), dtype=jnp.float32)
    z2, ld2 = invertible_1x1_conv_forward(x2, P2, L2, U2, S2, block_m=32, block_n=128)
    z2 = jax.block_until_ready(z2)
    z2_ref, ld2_ref = reference_forward(x2, P2, L2, U2, S2)
    assert jnp.allclose(z2, z2_ref, atol=1e-3, rtol=1e-3), "z mismatch (col-split)"
    assert jnp.allclose(ld2, ld2_ref, atol=1e-5, rtol=1e-5), "log_det mismatch (col-split)"

    print("KERNEL_OK")
</pallas_src>

<mosaic_0001>
module attributes {stable_mosaic.version = 11 : i64} {
  func.func @_xw_kernel(%arg0: i32, %arg1: memref<128x128xf32, #tpu.memory_space<vmem>>, %arg2: memref<1x128xf32, #tpu.memory_space<vmem>>, %arg3: memref<1x128xf32, #tpu.memory_space<vmem>>) attributes {dimension_semantics = [#tpu.dimension_semantics<parallel>], iteration_bounds = array<i64: 1>, scalar_prefetch = 0 : i64, scratch_operands = 0 : i64, tpu.core_type = #tpu.core_type<tc>, window_params = [{pipeline_mode = #tpu.pipeline_mode<synchronous>, transform_indices = @transform_0, window_bounds = array<i64: 128, 128>}, {transform_indices = @transform_1, window_bounds = array<i64: 1, 128>}, {transform_indices = @transform_2, window_bounds = array<i64: 1, 128>}]} {
    %c0 = arith.constant 0 : index
    %c0_0 = arith.constant 0 : index
    %0 = vector.load %arg2[%c0, %c0_0] : memref<1x128xf32, #tpu.memory_space<vmem>>, vector<1x128xf32>
    %c0_1 = arith.constant 0 : index
    %c0_2 = arith.constant 0 : index
    %1 = vector.load %arg1[%c0_1, %c0_2] : memref<128x128xf32, #tpu.memory_space<vmem>>, vector<128x128xf32>
    %cst = arith.constant dense<0.000000e+00> : vector<1x128xf32>
    %2 = tpu.matmul %0, %1, %cst {dimension_numbers = #tpu.dot_dimension_numbers<[1], [0], [0], [1], [0, 0, 1, 1], [], []>} : vector<1x128xf32>, vector<128x128xf32>, vector<1x128xf32> -> vector<1x128xf32>
    %c0_3 = arith.constant 0 : index
    %c0_4 = arith.constant 0 : index
    %3 = vector.load %arg3[%c0_3, %c0_4] : memref<1x128xf32, #tpu.memory_space<vmem>>, vector<1x128xf32>
    tpu.vector_store %arg3[%c0_3, %c0_4], %2 {strides = array<i32>} : memref<1x128xf32, #tpu.memory_space<vmem>>, vector<1x128xf32>,
    return
  }
  func.func @transform_0(%arg0: i32) -> (i32, i32) {
    %c0_i32 = arith.constant 0 : i32
    %c0_i32_0 = arith.constant 0 : i32
    %c0_i32_1 = arith.constant 0 : i32
    return %c0_i32, %c0_i32_0 : i32, i32
  }
  func.func @transform_1(%arg0: i32) -> (i32, i32) {
    %c0_i32 = arith.constant 0 : i32
    %c0_i32_0 = arith.constant 0 : i32
    return %arg0, %c0_i32 : i32, i32
  }
  func.func @transform_2(%arg0: i32) -> (i32, i32) {
    %c0_i32 = arith.constant 0 : i32
    %c0_i32_0 = arith.constant 0 : i32
    return %arg0, %c0_i32 : i32, i32
  }
}

</mosaic_0001>

<bundles_post_ra>
// kernel: invertible_1x1_conv_forward.1
= control target key start
LH: loop header
LB: loop body
LE: loop exit
PB: predicated region body
PF: predicated region fallthrough
CT: control target
= control target key end

     0   :  { %s122_s0 = inlined_call_operand.vmem [shape: f32[128,128], index: 0, kind: input, shape index: {}]   ;;  %s123_s1 = inlined_call_operand.vmem [shape: f32[1,128], index: 1, kind: input, shape index: {}]   ;;  %s124_s2 = inlined_call_operand.vmem [shape: f32[1,128], index: 2, kind: output, shape index: {}]  }
   0x1   :  { %v27_v0 = vld [vmem:[%s122_s0 + $0x78] sm:$0xff]  ;;  %v26_v1 = vld [vmem:[%s122_s0 + $0x70] sm:$0xff]  ;;  %v25_v2 = vld [vmem:[%s122_s0 + $0x68] sm:$0xff] }
   0x2   :  { %28 = vmatpush.msra.mxu0 %v27_v0  ;;  %v24_v3 = vld [vmem:[%s122_s0 + $0x60] sm:$0xff]  ;;  %v23_v4 = vld [vmem:[%s122_s0 + $0x58] sm:$0xff]  ;;  %v22_v5 = vld [vmem:[%s122_s0 + $0x50] sm:$0xff] }
   0x3   :  { %v21_v6 = vld [vmem:[%s122_s0 + $0x48] sm:$0xff]  ;;  %v20_v7 = vld [vmem:[%s122_s0 + $0x40] sm:$0xff]  ;;  %v19_v8 = vld [vmem:[%s122_s0 + $0x38] sm:$0xff] }
   0x4   :  { %29 = vmatpush.msra.mxu0 %v26_v1  ;;  %v18_v9 = vld [vmem:[%s122_s0 + $0x30] sm:$0xff]  ;;  %v17_v10 = vld [vmem:[%s122_s0 + $0x28] sm:$0xff]  ;;  %v16_v11 = vld [vmem:[%s122_s0 + $0x20] sm:$0xff] }
   0x5   :  { %v15_v12 = vld [vmem:[%s122_s0 + $0x18] sm:$0xff]  ;;  %v14_v13 = vld [vmem:[%s122_s0 + $0x10] sm:$0xff]  ;;  %v13_v14 = vld [vmem:[%s122_s0 + $0x8] sm:$0xff] }
   0x6   :  { %30 = vmatpush.msra.mxu0 %v25_v2  ;;  %v12_v15 = vld [vmem:[%s122_s0] sm:$0xff] }
   0x7   :  { %v11_v16 = vld [vmem:[%s123_s1] sm:$0x1] }
   0x8   :  { %31 = vmatpush.msra.mxu0 %v24_v3 }
   0xa   :  { %32 = vmatpush.msra.mxu0 %v23_v4 }
   0xc   :  { %33 = vmatpush.msra.mxu0 %v22_v5 }
   0xe   :  { %34 = vmatpush.msra.mxu0 %v21_v6 }
  0x10   :  { %35 = vmatpush.msra.mxu0 %v20_v7 }
  0x12   :  { %36 = vmatpush.msra.mxu0 %v19_v8 }
  0x14   :  { %37 = vmatpush.msra.mxu0 %v18_v9 }
  0x16   :  { %38 = vmatpush.msra.mxu0 %v17_v10 }
  0x18   :  { %39 = vmatpush.msra.mxu0 %v16_v11 }
  0x1a   :  { %40 = vmatpush.msra.mxu0 %v15_v12 }
  0x1c   :  { %41 = vmatpush.msra.mxu0 %v14_v13 }
  0x1e   :  { %42 = vmatpush.msra.mxu0 %v13_v14 }
  0x20   :  { %43 = vmatpush.msra.mxu0 %v12_v15 }
  0x21   :  { %44 = vmatmul.f32.vlgmr.msra.gmra.mxu0 %v11_v16 }
  0x9e   :  { %v45_v17 = vpop.f32.mrf.mxu0 }
  0x9f   :  { %48 = vst [vmem:[%s124_s2] sm:$0x1] %v45_v17 }

</bundles_post_ra>
